<compile_context>
chip_gen: v5e
topology: v5e:2x2
jax: 0.10.0
libtpu: 0.0.40
codegen_flags: <defaults>
</compile_context>

<pallas_src>
import jax
import jax.numpy as jnp
from jax.experimental import pallas as pl
from jax.experimental.pallas import tpu as pltpu

HIDDEN_DIM = 64


def _osg_decoder_kernel(x_ref, w1_ref, b1_ref, w2_ref, b2_ref, o_ref):
    # x_ref: (TILE, pack*C) tile of the packed input.  All gains/lr multipliers
    # are already folded into w*/b* on the host.
    x = x_ref[...].astype(jnp.float32)

    # --- FullyConnectedLayer 1 (block-diagonal, pre-scaled weights) ---
    h = jnp.dot(x, w1_ref[...], preferred_element_type=jnp.float32) + b1_ref[...]

    # --- Softplus (numerically stable; matches torch.nn.Softplus to <2e-9) ---
    h = jnp.maximum(h, 0.0) + jnp.log1p(jnp.exp(-jnp.abs(h)))

    # --- FullyConnectedLayer 2 ---
    y = jnp.dot(h, w2_ref[...], preferred_element_type=jnp.float32) + b2_ref[...]

    # --- fused output squashing: (sigmoid(y)*1.002 - 0.001)*2 - 1 ---
    o_ref[...] = (jax.nn.sigmoid(y) * 2.004 - 1.002).astype(o_ref.dtype)


def _choose_pack(C, H, out_dim):
    """Smallest row-packing factor that makes every feature dim 128-lane dense."""
    for p in (1, 2, 4, 8, 16):
        if (p * C) % 128 == 0 and (p * H) % 128 == 0 and (p * out_dim) % 128 == 0:
            return p
    return 1


def osg_decoder(sampled_features, w1, b1, w2, b2, *, lr_multiplier=1.0,
                row_tile=512):
    """Pallas implementation of OSGDecoder.forward.

    sampled_features: (N, M, C)
    w1: (HIDDEN_DIM, C)        b1: (HIDDEN_DIM,)
    w2: (OUT_DIM, HIDDEN_DIM)  b2: (OUT_DIM,)
    """
    N, M, C = sampled_features.shape
    H, C_in = w1.shape
    assert C_in == C, "w1 shape mismatch"
    out_dim = w2.shape[0]
    NM = N * M
    in_dtype = sampled_features.dtype
    f32 = jnp.float32

    # ---- one-time host-side constant folding (gains + lr multiplier) ----
    w1_s = jnp.transpose(w1).astype(f32) * (lr_multiplier / (C ** 0.5))   # (C, H)
    w2_s = jnp.transpose(w2).astype(f32) * (lr_multiplier / (H ** 0.5))   # (H, out)
    b1_s = b1.astype(f32) * lr_multiplier
    b2_s = b2.astype(f32) * lr_multiplier

    # ---- lane-dense row packing: `pack` logical rows per physical row ----
    pack = _choose_pack(C, H, out_dim)
    eye = jnp.eye(pack, dtype=f32)
    w1_bd = jnp.kron(eye, w1_s)                           # (pack*C, pack*H)
    w2_bd = jnp.kron(eye, w2_s)                           # (pack*H, pack*out)
    b1_bd = jnp.tile(b1_s, pack).reshape(1, pack * H)
    b2_bd = jnp.tile(b2_s, pack).reshape(1, pack * out_dim)

    # ---- tiling: big row tiles, pad the tail instead of asserting ----
    rows = pl.cdiv(NM, pack)                    # packed rows required
    tile = min(row_tile, rows)
    tile = ((tile + 7) // 8) * 8                # sublane multiple of 8
    rows_pad = pl.cdiv(rows, tile) * tile
    NM_pad = rows_pad * pack

    x_flat = sampled_features.reshape(NM, C).astype(f32)
    if NM_pad != NM:
        x_flat = jnp.pad(x_flat, ((0, NM_pad - NM), (0, 0)))
    x_packed = x_flat.reshape(rows_pad, pack * C)

    grid = (rows_pad // tile,)                  # "parallel" -> shards over TCs on v7x
    # NOTE: output could be emitted as bf16 here to halve writeback traffic if
    # downstream consumers accept it; we keep the input dtype for exact parity.
    out_packed = pl.pallas_call(
        _osg_decoder_kernel,
        out_shape=jax.ShapeDtypeStruct((rows_pad, pack * out_dim), in_dtype),
        grid_spec=pltpu.PrefetchScalarGridSpec(
            num_scalar_prefetch=0,
            grid=grid,
            in_specs=[
                pl.BlockSpec((tile, pack * C), lambda i: (i, 0)),          # x tile
                pl.BlockSpec((pack * C, pack * H), lambda i: (0, 0)),      # W1 (bd)
                pl.BlockSpec((1, pack * H), lambda i: (0, 0)),             # b1
                pl.BlockSpec((pack * H, pack * out_dim), lambda i: (0, 0)),# W2 (bd)
                pl.BlockSpec((1, pack * out_dim), lambda i: (0, 0)),       # b2
            ],
            out_specs=pl.BlockSpec((tile, pack * out_dim), lambda i: (i, 0)),
        ),
        compiler_params=pltpu.CompilerParams(
            dimension_semantics=("parallel",)),
    )(x_packed, w1_bd, b1_bd, w2_bd, b2_bd)

    out = out_packed.reshape(NM_pad, out_dim)[:NM]
    return out.reshape(N, M, out_dim)


def _reference(sampled_features, w1, b1, w2, b2, lr_multiplier=1.0):
    N, M, C = sampled_features.shape
    x = sampled_features.reshape(N * M, C)
    h = x @ (w1.T * (lr_multiplier / (C ** 0.5))) + b1 * lr_multiplier
    h = jax.nn.softplus(h)
    y = h @ (w2.T * (lr_multiplier / (HIDDEN_DIM ** 0.5))) + b2 * lr_multiplier
    out = jax.nn.sigmoid(y) * (1 + 2 * 0.001) - 0.001
    out = out * 2 - 1
    return out.reshape(N, M, -1)


if __name__ == "__main__":
    # Small shapes consistent with the module (triplane samples per batch).
    N, M, C = 2, 64, 32          # n_features = 32
    OUT_DIM = 32                 # options['decoder_output_dim']
    LR_MUL = 1.0                 # options['decoder_lr_mul']

    key = jax.random.PRNGKey(0)
    kx, kw1, kw2 = jax.random.split(key, 3)

    sampled_features = jax.random.normal(kx, (N, M, C), dtype=jnp.float32)

    # FullyConnectedLayer init: weight = randn(out, in) / lr_multiplier, bias = 0
    w1 = jax.random.normal(kw1, (HIDDEN_DIM, C), dtype=jnp.float32) / LR_MUL
    b1 = jnp.zeros((HIDDEN_DIM,), dtype=jnp.float32)
    w2 = jax.random.normal(kw2, (OUT_DIM, HIDDEN_DIM), dtype=jnp.float32) / LR_MUL
    b2 = jnp.zeros((OUT_DIM,), dtype=jnp.float32)

    out = osg_decoder(sampled_features, w1, b1, w2, b2, lr_multiplier=LR_MUL)
    out = jax.block_until_ready(out)

    ref = _reference(sampled_features, w1, b1, w2, b2, LR_MUL)
    assert out.shape == (N, M, OUT_DIM)
    assert jnp.allclose(out, ref, atol=1e-5, rtol=1e-5), \
        f"max abs err {jnp.max(jnp.abs(out - ref))}"

    print("KERNEL_OK")
</pallas_src>

<mosaic_0001>
module attributes {stable_mosaic.version = 11 : i64} {
  func.func @_osg_decoder_kernel(%arg0: i32, %arg1: memref<32x128xf32, #tpu.memory_space<vmem>>, %arg2: memref<128x256xf32, #tpu.memory_space<vmem>>, %arg3: memref<1x256xf32, #tpu.memory_space<vmem>>, %arg4: memref<256x128xf32, #tpu.memory_space<vmem>>, %arg5: memref<1x128xf32, #tpu.memory_space<vmem>>, %arg6: memref<32x128xf32, #tpu.memory_space<vmem>>) attributes {dimension_semantics = [#tpu.dimension_semantics<parallel>], iteration_bounds = array<i64: 1>, scalar_prefetch = 0 : i64, scratch_operands = 0 : i64, tpu.core_type = #tpu.core_type<tc>, window_params = [{transform_indices = @transform_0, window_bounds = array<i64: 32, 128>}, {pipeline_mode = #tpu.pipeline_mode<synchronous>, transform_indices = @transform_1, window_bounds = array<i64: 128, 256>}, {pipeline_mode = #tpu.pipeline_mode<synchronous>, transform_indices = @transform_2, window_bounds = array<i64: 1, 256>}, {pipeline_mode = #tpu.pipeline_mode<synchronous>, transform_indices = @transform_3, window_bounds = array<i64: 256, 128>}, {pipeline_mode = #tpu.pipeline_mode<synchronous>, transform_indices = @transform_4, window_bounds = array<i64: 1, 128>}, {transform_indices = @transform_5, window_bounds = array<i64: 32, 128>}]} {
    %c0 = arith.constant 0 : index
    %c0_0 = arith.constant 0 : index
    %0 = vector.load %arg1[%c0, %c0_0] : memref<32x128xf32, #tpu.memory_space<vmem>>, vector<32x128xf32>
    %c0_1 = arith.constant 0 : index
    %c0_2 = arith.constant 0 : index
    %1 = vector.load %arg2[%c0_1, %c0_2] : memref<128x256xf32, #tpu.memory_space<vmem>>, vector<128x256xf32>
    %cst = arith.constant dense<0.000000e+00> : vector<32x256xf32>
    %2 = tpu.matmul %0, %1, %cst {dimension_numbers = #tpu.dot_dimension_numbers<[1], [0], [0], [1], [0, 0, 1, 1], [], []>} : vector<32x128xf32>, vector<128x256xf32>, vector<32x256xf32> -> vector<32x256xf32>
    %c0_3 = arith.constant 0 : index
    %c0_4 = arith.constant 0 : index
    %3 = vector.load %arg3[%c0_3, %c0_4] : memref<1x256xf32, #tpu.memory_space<vmem>>, vector<1x256xf32>
    %4 = vector.broadcast %3 : vector<1x256xf32> to vector<32x256xf32>
    %5 = arith.addf %2, %4 : vector<32x256xf32>
    %cst_5 = arith.constant 0.000000e+00 : f32
    %6 = vector.broadcast %cst_5 : f32 to vector<32x256xf32>
    %7 = arith.maximumf %5, %6 : vector<32x256xf32>
    %8 = math.absf %5 : vector<32x256xf32>
    %cst_6 = arith.constant 0.000000e+00 : f32
    %9 = vector.broadcast %cst_6 : f32 to vector<32x256xf32>
    %10 = arith.subf %9, %8 : vector<32x256xf32>
    %11 = math.exp %10 : vector<32x256xf32>
    %12 = math.log1p %11 : vector<32x256xf32>
    %13 = arith.addf %7, %12 : vector<32x256xf32>
    %c0_7 = arith.constant 0 : index
    %c0_8 = arith.constant 0 : index
    %14 = vector.load %arg4[%c0_7, %c0_8] : memref<256x128xf32, #tpu.memory_space<vmem>>, vector<256x128xf32>
    %cst_9 = arith.constant dense<0.000000e+00> : vector<32x128xf32>
    %15 = tpu.matmul %13, %14, %cst_9 {dimension_numbers = #tpu.dot_dimension_numbers<[1], [0], [0], [1], [0, 0, 1, 1], [], []>} : vector<32x256xf32>, vector<256x128xf32>, vector<32x128xf32> -> vector<32x128xf32>
    %c0_10 = arith.constant 0 : index
    %c0_11 = arith.constant 0 : index
    %16 = vector.load %arg5[%c0_10, %c0_11] : memref<1x128xf32, #tpu.memory_space<vmem>>, vector<1x128xf32>
    %17 = vector.broadcast %16 : vector<1x128xf32> to vector<32x128xf32>
    %18 = arith.addf %15, %17 : vector<32x128xf32>
    %19 = arith.negf %18 : vector<32x128xf32>
    %20 = math.exp %19 : vector<32x128xf32>
    %cst_12 = arith.constant 1.000000e+00 : f32
    %21 = vector.broadcast %cst_12 : f32 to vector<32x128xf32>
    %22 = arith.addf %21, %20 : vector<32x128xf32>
    %23 = arith.divf %21, %22 : vector<32x128xf32>
    %cst_13 = arith.constant 2.004000e+00 : f32
    %24 = vector.broadcast %cst_13 : f32 to vector<32x128xf32>
    %25 = arith.mulf %23, %24 : vector<32x128xf32>
    %cst_14 = arith.constant 1.002000e+00 : f32
    %26 = vector.broadcast %cst_14 : f32 to vector<32x128xf32>
    %27 = arith.subf %25, %26 : vector<32x128xf32>
    %c0_15 = arith.constant 0 : index
    %c0_16 = arith.constant 0 : index
    %28 = vector.load %arg6[%c0_15, %c0_16] : memref<32x128xf32, #tpu.memory_space<vmem>>, vector<32x128xf32>
    tpu.vector_store %arg6[%c0_15, %c0_16], %27 {strides = array<i32>} : memref<32x128xf32, #tpu.memory_space<vmem>>, vector<32x128xf32>,
    return
  }
  func.func @transform_0(%arg0: i32) -> (i32, i32) {
    %c0_i32 = arith.constant 0 : i32
    %c0_i32_0 = arith.constant 0 : i32
    return %arg0, %c0_i32 : i32, i32
  }
  func.func @transform_1(%arg0: i32) -> (i32, i32) {
    %c0_i32 = arith.constant 0 : i32
    %c0_i32_0 = arith.constant 0 : i32
    %c0_i32_1 = arith.constant 0 : i32
    return %c0_i32, %c0_i32_0 : i32, i32
  }
  func.func @transform_2(%arg0: i32) -> (i32, i32) {
    %c0_i32 = arith.constant 0 : i32
    %c0_i32_0 = arith.constant 0 : i32
    %c0_i32_1 = arith.constant 0 : i32
    return %c0_i32, %c0_i32_0 : i32, i32
  }
  func.func @transform_3(%arg0: i32) -> (i32, i32) {
    %c0_i32 = arith.constant 0 : i32
    %c0_i32_0 = arith.constant 0 : i32
    %c0_i32_1 = arith.constant 0 : i32
    return %c0_i32, %c0_i32_0 : i32, i32
  }
  func.func @transform_4(%arg0: i32) -> (i32, i32) {
    %c0_i32 = arith.constant 0 : i32
    %c0_i32_0 = arith.constant 0 : i32
    %c0_i32_1 = arith.constant 0 : i32
    return %c0_i32, %c0_i32_0 : i32, i32
  }
  func.func @transform_5(%arg0: i32) -> (i32, i32) {
    %c0_i32 = arith.constant 0 : i32
    %c0_i32_0 = arith.constant 0 : i32
    return %arg0, %c0_i32 : i32, i32
  }
}

</mosaic_0001>

<bundles_post_ra>
// kernel: tpu_custom_call.1
= control target key start
LH: loop header
LB: loop body
LE: loop exit
PB: predicated region body
PF: predicated region fallthrough
CT: control target
= control target key end

     0   :  { %10 = vsyncpa [#allocation3], 0  ;;  %s803_s0 = inlined_call_operand.hbm [shape: f32[32,128], index: 0, kind: input, shape index: {}]   ;;  %s804_s1 = inlined_call_operand.hbm [shape: f32[128,256], index: 1, kind: input, shape index: {}]   ;;  %s805_s2 = inlined_call_operand.hbm [shape: f32[1,256], index: 2, kind: input, shape index: {}]   ;;  %s806_s3 = inlined_call_operand.hbm [shape: f32[256,128], index: 3, kind: input, shape index: {}]   ;;  %s807_s4 = inlined_call_operand.vmem [shape: f32[1,128], index: 4, kind: input, shape index: {}]   ;;  %s808_s5 = inlined_call_operand.hbm [shape: f32[32,128], index: 5, kind: output, shape index: {}]  }
   0x1   :  { %11 = vsyncpa [#allocation6], 0 }
   0x2   :  { %12 = vsyncpa [#allocation9], 0  ;;  %s31_s20 = sshll.u32 %s804_s1, 4  ;;  %s32_s20 = int_to_ptr.hbm [resolvable:$true] %s31_s20 }
   0x3   :  { %13 = vsyncpa [#allocation4], 0  ;;  %s699_s21 = smov [#allocation5]   ;;  %s18_s25 = sshll.u32 %s803_s0, 4  ;;  %s19_s25 = int_to_ptr.hbm [resolvable:$true] %s18_s25 }
   0x4   :  { %s33_s22 = sshll.u32 %s699_s21, 4  ;;  %s700_s26 = smov 256   ;;  %s34_s22 = int_to_ptr.vmem [resolvable:$true] %s33_s22 }
   0x5   :  { %s701_s27 = smov 16   ;;  %s702_s28 = smov [#allocation2]  }
   0x6   :  { %39 = dma.hbm_to_vmem [thread:$0]  %s32_s20, 4096, %s34_s22, [#allocation6], %s700_s26, %s700_s26, %s701_s27  }
   0x7   :  { %s20_s29 = sshll.u32 %s702_s28, 4  ;;  %s703_s30 = smov 128   ;;  %s21_s29 = int_to_ptr.vmem [resolvable:$true] %s20_s29 }
   0x8   :  { %s704_s6 = smov 8   ;;  %s45_s8 = sshll.u32 %s805_s2, 4  ;;  %s46_s8 = int_to_ptr.hbm [resolvable:$true] %s45_s8 }
   0x9   :  { %26 = dma.hbm_to_vmem [thread:$0]  %s19_s25, 512, %s21_s29, [#allocation3], %s703_s30, %s703_s30, %s704_s6  }
   0xa   :  { %s705_s9 = smov [#allocation7]   ;;  %s55_s12 = sshll.u32 %s806_s3, 4  ;;  %s56_s12 = int_to_ptr.hbm [resolvable:$true] %s55_s12 }
   0xb   :  { %s47_s0 = sshll.u32 %s705_s9, 4  ;;  %s706_s13 = smov [#allocation8]   ;;  %s48_s0 = int_to_ptr.vmem [resolvable:$true] %s47_s0 }
   0xc   :  { %50 = dma.hbm_to_vmem [thread:$0]  %s46_s8, 32, %s48_s0, [#allocation6]  }
   0xd   :  { %s57_s14 = sshll.u32 %s706_s13, 4  ;;  %s58_s14 = int_to_ptr.vmem [resolvable:$true] %s57_s14 }
   0xe   :  { %63 = dma.hbm_to_vmem [thread:$0]  %s56_s12, 4096, %s58_s14, [#allocation9], %s703_s30, %s703_s30, %s704_s6  }
   0xf   :  { %691 = dma.done.wait [#allocation3], 512  }
  0x10   :  { %692 = vsyncadd [#allocation3], 4294966784 }
  0x11   :  { %693 = dma.done.wait [#allocation6], 4128  }
  0x12   :  { %694 = vsyncadd [#allocation6], 4294963168 }
  0x13   :  { %695 = dma.done.wait [#allocation9], 4096  }
  0x14   :  { %696 = vsyncadd [#allocation9], 4294963200  ;;  %v116_v0 = vld [vmem:[#allocation5 + $0xf0] sm:$0xff]  ;;  %v117_v1 = vld [vmem:[#allocation5 + $0xf8] sm:$0xff]  ;;  %s490_s18 = sshll.u32 %s808_s5, 4  ;;  %s491_s18 = int_to_ptr.hbm [resolvable:$true] %s490_s18 }
  0x15   :  { %v114_v2 = vld [vmem:[#allocation5 + $0xe0] sm:$0xff]  ;;  %124 = vmatpush.msra.mxu0 %v116_v0  ;;  %153 = vmatpush.msra.mxu1 %v117_v1  ;;  %v115_v3 = vld [vmem:[#allocation5 + $0xe8] sm:$0xff]  ;;  %v112_v4 = vld [vmem:[#allocation5 + $0xd0] sm:$0xff] }
  0x16   :  { %v113_v5 = vld [vmem:[#allocation5 + $0xd8] sm:$0xff]  ;;  %v110_v6 = vld [vmem:[#allocation5 + $0xc0] sm:$0xff]  ;;  %v111_v7 = vld [vmem:[#allocation5 + $0xc8] sm:$0xff] }
  0x17   :  { %125 = vmatpush.msra.mxu0 %v114_v2  ;;  %154 = vmatpush.msra.mxu1 %v115_v3  ;;  %v108_v8 = vld [vmem:[#allocation5 + $0xb0] sm:$0xff]  ;;  %v109_v9 = vld [vmem:[#allocation5 + $0xb8] sm:$0xff]  ;;  %v106_v10 = vld [vmem:[#allocation5 + $0xa0] sm:$0xff] }
  0x18   :  { %v107_v11 = vld [vmem:[#allocation5 + $0xa8] sm:$0xff]  ;;  %v104_v12 = vld [vmem:[#allocation5 + $0x90] sm:$0xff]  ;;  %v105_v13 = vld [vmem:[#allocation5 + $0x98] sm:$0xff] }
  0x19   :  { %126 = vmatpush.msra.mxu0 %v112_v4  ;;  %155 = vmatpush.msra.mxu1 %v113_v5  ;;  %v102_v14 = vld [vmem:[#allocation5 + $0x80] sm:$0xff]  ;;  %v103_v15 = vld [vmem:[#allocation5 + $0x88] sm:$0xff]  ;;  %v100_v16 = vld [vmem:[#allocation5 + $0x70] sm:$0xff] }
  0x1a   :  { %v101_v17 = vld [vmem:[#allocation5 + $0x78] sm:$0xff]  ;;  %v98_v18 = vld [vmem:[#allocation5 + $0x60] sm:$0xff]  ;;  %v99_v19 = vld [vmem:[#allocation5 + $0x68] sm:$0xff] }
  0x1b   :  { %127 = vmatpush.msra.mxu0 %v110_v6  ;;  %156 = vmatpush.msra.mxu1 %v111_v7  ;;  %v96_v20 = vld [vmem:[#allocation5 + $0x50] sm:$0xff]  ;;  %v97_v21 = vld [vmem:[#allocation5 + $0x58] sm:$0xff]  ;;  %v94_v22 = vld [vmem:[#allocation5 + $0x40] sm:$0xff] }
  0x1c   :  { %v95_v23 = vld [vmem:[#allocation5 + $0x48] sm:$0xff]  ;;  %v92_v24 = vld [vmem:[#allocation5 + $0x30] sm:$0xff]  ;;  %v93_v25 = vld [vmem:[#allocation5 + $0x38] sm:$0xff] }
  0x1d   :  { %128 = vmatpush.msra.mxu0 %v108_v8  ;;  %157 = vmatpush.msra.mxu1 %v109_v9  ;;  %v90_v26 = vld [vmem:[#allocation5 + $0x20] sm:$0xff]  ;;  %v91_v27 = vld [vmem:[#allocation5 + $0x28] sm:$0xff]  ;;  %v88_v30 = vld [vmem:[#allocation5 + $0x10] sm:$0xff] }
  0x1e   :  { %v317_v28 = vld [vmem:[#allocation8 + $0x78] sm:$0xff]  ;;  %v87_v33 = vld [vmem:[#allocation5 + $0x8] sm:$0xff]  ;;  %v84_v36 = vld [vmem:[#allocation2 + $0x10] sm:$0xff] }
  0x1f   :  { %129 = vmatpush.msra.mxu0 %v106_v10  ;;  %158 = vmatpush.msra.mxu1 %v107_v11  ;;  %v333_v29 = vld [vmem:[#allocation8 + $0xf8] sm:$0xff]  ;;  %v83_v35 = vld [vmem:[#allocation2 + $0x8] sm:$0xff]  ;;  %v316_v38 = vld [vmem:[#allocation8 + $0x70] sm:$0xff] }
  0x20   :  { %v89_v31 = vld [vmem:[#allocation5 + $0x18] sm:$0xff]  ;;  %338 = vmatpush.msra.mxu2 %v317_v28  ;;  %367 = vmatpush.msra.mxu3 %v333_v29  ;;  %v86_v32 = vld [vmem:[#allocation5] sm:$0xff]  ;;  %v315_v40 = vld [vmem:[#allocation8 + $0x68] sm:$0xff] }
  0x21   :  { %130 = vmatpush.msra.mxu0 %v104_v12  ;;  %159 = vmatpush.msra.mxu1 %v105_v13  ;;  %v82_v34 = vld [vmem:[#allocation2] sm:$0xff]  ;;  %v85_v37 = vld [vmem:[#allocation2 + $0x18] sm:$0xff]  ;;  %v331_v41 = vld [vmem:[#allocation8 + $0xe8] sm:$0xff] }
  0x22   :  { %v332_v39 = vld [vmem:[#allocation8 + $0xf0] sm:$0xff]  ;;  %339 = vmatpush.msra.mxu2 %v316_v38  ;;  %v314_v42 = vld [vmem:[#allocation8 + $0x60] sm:$0xff]  ;;  %v313_v44 = vld [vmem:[#allocation8 + $0x58] sm:$0xff] }
  0x23   :  { %131 = vmatpush.msra.mxu0 %v102_v14  ;;  %160 = vmatpush.msra.mxu1 %v103_v15  ;;  %v330_v43 = vld [vmem:[#allocation8 + $0xe0] sm:$0xff]  ;;  %v329_v45 = vld [vmem:[#allocation8 + $0xd8] sm:$0xff]  ;;  %v312_v46 = vld [vmem:[#allocation8 + $0x50] sm:$0xff] }
  0x24   :  { %368 = vmatpush.msra.mxu3 %v332_v39  ;;  %340 = vmatpush.msra.mxu2 %v315_v40  ;;  %v328_v47 = vld [vmem:[#allocation8 + $0xd0] sm:$0xff]  ;;  %v311_v48 = vld [vmem:[#allocation8 + $0x48] sm:$0xff]  ;;  %v310_v50 = vld [vmem:[#allocation8 + $0x40] sm:$0xff] }
  0x25   :  { %132 = vmatpush.msra.mxu0 %v100_v16  ;;  %161 = vmatpush.msra.mxu1 %v101_v17  ;;  %v327_v49 = vld [vmem:[#allocation8 + $0xc8] sm:$0xff]  ;;  %v326_v51 = vld [vmem:[#allocation8 + $0xc0] sm:$0xff]  ;;  %v309_v52 = vld [vmem:[#allocation8 + $0x38] sm:$0xff] }
  0x26   :  { %369 = vmatpush.msra.mxu3 %v331_v41  ;;  %341 = vmatpush.msra.mxu2 %v314_v42  ;;  %v325_v53 = vld [vmem:[#allocation8 + $0xb8] sm:$0xff]  ;;  %v308_v54 = vld [vmem:[#allocation8 + $0x30] sm:$0xff]  ;;  %v307_v56 = vld [vmem:[#allocation8 + $0x28] sm:$0xff] }
  0x27   :  { %133 = vmatpush.msra.mxu0 %v98_v18  ;;  %162 = vmatpush.msra.mxu1 %v99_v19  ;;  %v324_v55 = vld [vmem:[#allocation8 + $0xb0] sm:$0xff]  ;;  %v323_v57 = vld [vmem:[#allocation8 + $0xa8] sm:$0xff]  ;;  %v306_v58 = vld [vmem:[#allocation8 + $0x20] sm:$0xff] }
  0x28   :  { %370 = vmatpush.msra.mxu3 %v330_v43  ;;  %342 = vmatpush.msra.mxu2 %v313_v44  ;;  %v322_v59 = vld [vmem:[#allocation8 + $0xa0] sm:$0xff]  ;;  %v305_v60 = vld [vmem:[#allocation8 + $0x18] sm:$0xff]  ;;  %v304_v62 = vld [vmem:[#allocation8 + $0x10] sm:$0xff] }
  0x29   :  { %134 = vmatpush.msra.mxu0 %v96_v20  ;;  %163 = vmatpush.msra.mxu1 %v97_v21  ;;  %v321_v61 = vld [vmem:[#allocation8 + $0x98] sm:$0xff]  ;;  %v320_v63 = vld [vmem:[#allocation8 + $0x90] sm:$0xff]  ;;  %v303_v1 = vld [vmem:[#allocation8 + $0x8] sm:$0xff] }
  0x2a   :  { %371 = vmatpush.msra.mxu3 %v329_v45  ;;  %343 = vmatpush.msra.mxu2 %v312_v46  ;;  %v118_v0 = vld [vmem:[#allocation7] sm:$0x3]  ;;  %v319_v2 = vld [vmem:[#allocation8 + $0x88] sm:$0xff]  ;;  %v302_v5 = vld [vmem:[#allocation8] sm:$0xff] }
  0x2b   :  { %135 = vmatpush.msra.mxu0 %v94_v22  ;;  %164 = vmatpush.msra.mxu1 %v95_v23  ;;  %v120_v3 = vperm.slane %v118_v0, 0  ;;  %v121_v4 = vperm.slane %v118_v0, 1  ;;  %v318_v6 = vld [vmem:[#allocation8 + $0x80] sm:$0xff] }
  0x2c   :  { %372 = vmatpush.msra.mxu3 %v328_v47  ;;  %344 = vmatpush.msra.mxu2 %v311_v48 }
  0x2d   :  { %136 = vmatpush.msra.mxu0 %v92_v24  ;;  %165 = vmatpush.msra.mxu1 %v93_v25 }
  0x2e   :  { %373 = vmatpush.msra.mxu3 %v327_v49  ;;  %345 = vmatpush.msra.mxu2 %v310_v50 }
  0x2f   :  { %137 = vmatpush.msra.mxu0 %v90_v26  ;;  %166 = vmatpush.msra.mxu1 %v91_v27 }
  0x30   :  { %374 = vmatpush.msra.mxu3 %v326_v51  ;;  %346 = vmatpush.msra.mxu2 %v309_v52 }
  0x31   :  { %138 = vmatpush.msra.mxu0 %v88_v30  ;;  %167 = vmatpush.msra.mxu1 %v89_v31 }
  0x32   :  { %375 = vmatpush.msra.mxu3 %v325_v53  ;;  %347 = vmatpush.msra.mxu2 %v308_v54 }
  0x33   :  { %139 = vmatpush.msra.mxu0 %v86_v32  ;;  %168 = vmatpush.msra.mxu1 %v87_v33 }
  0x34   :  { %140 = vmatmul.f32.vlgmr.msra.gmra.mxu0 %v82_v34  ;;  %169 = vmatmul.f32.vlgmr.msra.gmra.mxu1 %v82_v34 }
  0x35   :  { %376 = vmatpush.msra.mxu3 %v324_v55  ;;  %348 = vmatpush.msra.mxu2 %v307_v56 }
  0x37   :  { %377 = vmatpush.msra.mxu3 %v323_v57  ;;  %349 = vmatpush.msra.mxu2 %v306_v58 }
  0x39   :  { %378 = vmatpush.msra.mxu3 %v322_v59  ;;  %350 = vmatpush.msra.mxu2 %v305_v60 }
  0x3b   :  { %379 = vmatpush.msra.mxu3 %v321_v61  ;;  %351 = vmatpush.msra.mxu2 %v304_v62 }
  0x3c   :  { %143 = vmatmul.f32.gmra.mxu0 %v83_v35  ;;  %172 = vmatmul.f32.gmra.mxu1 %v83_v35 }
  0x3d   :  { %380 = vmatpush.msra.mxu3 %v320_v63  ;;  %352 = vmatpush.msra.mxu2 %v303_v1 }
  0x3f   :  { %381 = vmatpush.msra.mxu3 %v319_v2  ;;  %353 = vmatpush.msra.mxu2 %v302_v5 }
  0x41   :  { %382 = vmatpush.msra.mxu3 %v318_v6 }
  0x44   :  { %146 = vmatmul.f32.gmra.mxu0 %v84_v36  ;;  %175 = vmatmul.f32.gmra.mxu1 %v84_v36 }
  0x4c   :  { %149 = vmatmul.f32.gmra.mxu0 %v85_v37  ;;  %178 = vmatmul.f32.gmra.mxu1 %v85_v37 }
  0xb1   :  { %v141_v7 = vpop.f32.mrf.mxu0  ;;  %v170_v8 = vpop.f32.mrf.mxu1 }
  0xb2   :  { %v756_v9 = vadd.f32 %v141_v7, %v120_v3  ;;  %v758_v10 = vadd.f32 %v170_v8, %v121_v4 }
  0xb4   :  { %v190_v11 = vand.u32 2147483647, %v756_v9  ;;  %v191_v12 = vand.u32 2147483647, %v758_v10  ;;  %v182_v48 = vmax.f32 %v756_v9, 0.0  ;;  %v183_v57 = vmax.f32 %v758_v10, 0.0 }
  0xb6   :  { %v198_v13 = vsub.f32 0.0, %v190_v11  ;;  %v199_v14 = vsub.f32 0.0, %v191_v12 }
  0xb8   :  { %v206_v15 = vmul.f32 1.442695, %v198_v13  ;;  %v208_v16 = vmul.f32 1.442695, %v199_v14 }
  0xb9   :  { %v144_v17 = vpop.f32.mrf.mxu0  ;;  %v173_v18 = vpop.f32.mrf.mxu1 }
  0xba   :  { %523 = vpow2.f32 %v206_v15  ;;  %v762_v19 = vadd.f32 %v144_v17, %v120_v3  ;;  %v764_v20 = vadd.f32 %v173_v18, %v121_v4 }
  0xbb   :  { %525 = vpow2.f32 %v208_v16 }
  0xbc   :  { %v192_v21 = vand.u32 2147483647, %v762_v19  ;;  %v193_v22 = vand.u32 2147483647, %v764_v20 }
  0xbe   :  { %v200_v23 = vsub.f32 0.0, %v192_v21  ;;  %v201_v24 = vsub.f32 0.0, %v193_v22 }
  0xc0   :  { %v524_v25 = vpop.eup %523  ;;  %v210_v26 = vmul.f32 1.442695, %v200_v23  ;;  %v212_v27 = vmul.f32 1.442695, %v201_v24  ;;  %v184_v23 = vmax.f32 %v762_v19, 0.0 }
  0xc1   :  { %v526_v28 = vpop.eup %525  ;;  %v147_v29 = vpop.f32.mrf.mxu0  ;;  %v222_v31 = vadd.f32 1.0, %v524_v25  ;;  %v225_v37 = vmul.f32 -0.5, %v524_v25  ;;  %v228_v41 = vand.u32 2147483647, %v524_v25 }
  0xc2   :  { %v176_v30 = vpop.f32.mrf.mxu1  ;;  %527 = vpow2.f32 %v210_v26  ;;  %v768_v32 = vadd.f32 %v147_v29, %v120_v3  ;;  %v231_v34 = vadd.f32 1.0, %v526_v28  ;;  %v234_v38 = vmul.f32 -0.5, %v526_v28 }
  0xc3   :  { %v770_v33 = vadd.f32 %v176_v30, %v121_v4  ;;  %529 = vpow2.f32 %v212_v27  ;;  %v226_v45 = vadd.f32 1.0, %v225_v37  ;;  %v237_v51 = vand.u32 2147483647, %v526_v28 }
  0xc4   :  { %v194_v35 = vand.u32 2147483647, %v768_v32  ;;  %531 = vlog2.f32 %v222_v31  ;;  %v235_v46 = vadd.f32 1.0, %v234_v38  ;;  %vm780_vm0 = vcmp.lt.f32.partialorder %v228_v41, 0.0004427343 }
  0xc5   :  { %v195_v36 = vand.u32 2147483647, %v770_v33  ;;  %533 = vlog2.f32 %v231_v34  ;;  %v227_v63 = vmul.f32 %v524_v25, %v226_v45  ;;  %vm238_vm1 = vcmp.lt.f32.partialorder %v237_v51, 0.0004427343 }
  0xc6   :  { %v202_v39 = vsub.f32 0.0, %v194_v35  ;;  %v236_v0 = vmul.f32 %v526_v28, %v235_v46  ;;  %v185_v31 = vmax.f32 %v764_v20, 0.0  ;;  %v186_v45 = vmax.f32 %v768_v32, 0.0 }
  0xc7   :  { %v203_v40 = vsub.f32 0.0, %v195_v36 }
  0xc8   :  { %v528_v42 = vpop.eup %527  ;;  %v214_v43 = vmul.f32 1.442695, %v202_v39 }
  0xc9   :  { %v216_v44 = vmul.f32 1.442695, %v203_v40  ;;  %v530_v47 = vpop.eup %529  ;;  %v150_v49 = vpop.f32.mrf.mxu0  ;;  %v240_v52 = vadd.f32 1.0, %v528_v42  ;;  %v243_v59 = vmul.f32 -0.5, %v528_v42  ;;  %v246_v15 = vand.u32 2147483647, %v528_v42 }
  0xca   :  { %v179_v50 = vpop.f32.mrf.mxu1  ;;  %535 = vpow2.f32 %v214_v43  ;;  %v775_v53 = vadd.f32 %v150_v49, %v120_v3  ;;  %v249_v55 = vadd.f32 1.0, %v530_v47  ;;  %v532_v56 = vpop.eup %531  ;;  %v252_v3 = vmul.f32 -0.5, %v530_v47 }
  0xcb   :  { %v777_v54 = vadd.f32 %v179_v50, %v121_v4  ;;  %537 = vpow2.f32 %v216_v44  ;;  %v534_v60 = vpop.eup %533  ;;  %v224_v1 = vmul.f32 0.6931472, %v532_v56  ;;  %v244_v8 = vadd.f32 1.0, %v243_v59 }
  0xcc   :  { %v196_v61 = vand.u32 2147483647, %v775_v53  ;;  %v233_v2 = vmul.f32 0.6931472, %v534_v60  ;;  %539 = vlog2.f32 %v240_v52  ;;  %v253_v16 = vadd.f32 1.0, %v252_v3 }
  0xcd   :  { %v197_v62 = vand.u32 2147483647, %v777_v54  ;;  %541 = vlog2.f32 %v249_v55  ;;  %v230_v6 = vsel %vm780_vm0, %v227_v63, %v224_v1  ;;  %v255_v18 = vand.u32 2147483647, %v530_v47 }
  0xce   :  { %v204_v4 = vsub.f32 0.0, %v196_v61  ;;  %v239_v7 = vsel %vm238_vm1, %v236_v0, %v233_v2  ;;  %v294_v12 = vadd.f32 %v230_v6, %v182_v48  ;;  %v245_v27 = vmul.f32 %v528_v42, %v244_v8 }
  0xcf   :  { %v205_v5 = vsub.f32 0.0, %v197_v62  ;;  %v295_v13 = vadd.f32 %v239_v7, %v183_v57  ;;  %vm247_vm2 = vcmp.lt.f32.partialorder %v246_v15, 0.0004427343  ;;  %v254_v30 = vmul.f32 %v530_v47, %v253_v16 }
  0xd0   :  { %v536_v9 = vpop.eup %535  ;;  %v218_v10 = vmul.f32 1.442695, %v204_v4  ;;  %354 = vmatmul.f32.vlgmr.msra.gmra.mxu2 %v294_v12  ;;  %vm256_vm3 = vcmp.lt.f32.partialorder %v255_v18, 0.0004427343  ;;  %v187_v55 = vmax.f32 %v770_v33, 0.0  ;;  %v188_v33 = vmax.f32 %v775_v53, 0.0 }
  0xd1   :  { %v220_v11 = vmul.f32 1.442695, %v205_v5  ;;  %v538_v14 = vpop.eup %537  ;;  %v258_v17 = vadd.f32 1.0, %v536_v9  ;;  %383 = vmatmul.f32.vlgmr.msra.gmra.mxu3 %v295_v13  ;;  %v261_v24 = vmul.f32 -0.5, %v536_v9  ;;  %v264_v39 = vand.u32 2147483647, %v536_v9 }
  0xd2   :  { %543 = vpow2.f32 %v218_v10  ;;  %v267_v21 = vadd.f32 1.0, %v538_v14  ;;  %v540_v22 = vpop.eup %539  ;;  %v270_v28 = vmul.f32 -0.5, %v538_v14  ;;  %v273_v43 = vand.u32 2147483647, %v538_v14  ;;  %v522_v10 = vld [vmem:[%s807_s4] ss:$0 sm:$0xff] }
  0xd3   :  { %545 = vpow2.f32 %v220_v11  ;;  %v542_v25 = vpop.eup %541  ;;  %v242_v26 = vmul.f32 0.6931472, %v540_v22  ;;  %v262_v37 = vadd.f32 1.0, %v261_v24  ;;  %vm265_vm4 = vcmp.lt.f32.partialorder %v264_v39, 0.0004427343  ;;  %s707_s4 = smov [#allocation10]  }
  0xd4   :  { %547 = vlog2.f32 %v258_v17  ;;  %v251_v29 = vmul.f32 0.6931472, %v542_v25  ;;  %v271_v40 = vadd.f32 1.0, %v270_v28  ;;  %vm274_vm5 = vcmp.lt.f32.partialorder %v273_v43, 0.0004427343  ;;  %s488_s15 = sshll.u32 %s707_s4, 4  ;;  %s489_s15 = int_to_ptr.vmem [resolvable:$true] %s488_s15 }
  0xd5   :  { %549 = vlog2.f32 %v267_v21  ;;  %v248_v34 = vsel %vm247_vm2, %v245_v27, %v242_v26  ;;  %v263_v49 = vmul.f32 %v536_v9, %v262_v37  ;;  %v189_v5 = vmax.f32 %v777_v54, 0.0 }
  0xd6   :  { %v296_v35 = vadd.f32 %v248_v34, %v184_v23  ;;  %v257_v36 = vsel %vm256_vm3, %v254_v30, %v251_v29  ;;  %v272_v52 = vmul.f32 %v538_v14, %v271_v40 }
  0xd7   :  { %v297_v19 = vadd.f32 %v257_v36, %v185_v31 }
  0xd8   :  { %v544_v38 = vpop.eup %543  ;;  %357 = vmatmul.f32.gmra.mxu2 %v296_v35 }
  0xd9   :  { %v546_v41 = vpop.eup %545  ;;  %v276_v42 = vadd.f32 1.0, %v544_v38  ;;  %386 = vmatmul.f32.gmra.mxu3 %v297_v19  ;;  %v279_v46 = vmul.f32 -0.5, %v544_v38  ;;  %v282_v60 = vand.u32 2147483647, %v544_v38 }
  0xda   :  { %v548_v44 = vpop.eup %547  ;;  %v285_v47 = vadd.f32 1.0, %v546_v41  ;;  %v288_v50 = vmul.f32 -0.5, %v546_v41  ;;  %v291_v62 = vand.u32 2147483647, %v546_v41 }
  0xdb   :  { %v550_v20 = vpop.eup %549  ;;  %v260_v48 = vmul.f32 0.6931472, %v548_v44  ;;  %551 = vlog2.f32 %v276_v42  ;;  %v280_v32 = vadd.f32 1.0, %v279_v46  ;;  %vm283_vm6 = vcmp.lt.f32.partialorder %v282_v60, 0.0004427343 }
  0xdc   :  { %v269_v51 = vmul.f32 0.6931472, %v550_v20  ;;  %553 = vlog2.f32 %v285_v47  ;;  %v289_v61 = vadd.f32 1.0, %v288_v50  ;;  %vm292_vm7 = vcmp.lt.f32.partialorder %v291_v62, 0.0004427343 }
  0xdd   :  { %v266_v56 = vsel %vm265_vm4, %v263_v49, %v260_v48  ;;  %v281_v2 = vmul.f32 %v544_v38, %v280_v32 }
  0xde   :  { %v298_v57 = vadd.f32 %v266_v56, %v186_v45  ;;  %v275_v58 = vsel %vm274_vm5, %v272_v52, %v269_v51  ;;  %v290_v4 = vmul.f32 %v546_v41, %v289_v61 }
  0xdf   :  { %v299_v59 = vadd.f32 %v275_v58, %v187_v55 }
  0xe0   :  { %360 = vmatmul.f32.gmra.mxu2 %v298_v57 }
  0xe1   :  { %v552_v63 = vpop.eup %551  ;;  %389 = vmatmul.f32.gmra.mxu3 %v299_v59 }
  0xe2   :  { %v554_v0 = vpop.eup %553  ;;  %v278_v1 = vmul.f32 0.6931472, %v552_v63 }
  0xe3   :  { %v287_v3 = vmul.f32 0.6931472, %v554_v0 }
  0xe4   :  { %v284_v6 = vsel %vm283_vm6, %v281_v2, %v278_v1 }
  0xe5   :  { %v293_v7 = vsel %vm292_vm7, %v290_v4, %v287_v3  ;;  %v300_v8 = vadd.f32 %v284_v6, %v188_v33 }
  0xe6   :  { %v301_v9 = vadd.f32 %v293_v7, %v189_v5 }
  0xe8   :  { %363 = vmatmul.f32.gmra.mxu2 %v300_v8 }
  0xe9   :  { %392 = vmatmul.f32.gmra.mxu3 %v301_v9 }
 0x153   :  { %v355_v11 = vpop.f32.mrf.mxu2 }
 0x154   :  { %v384_v12 = vpop.f32.mrf.mxu3  ;;  %v356_v13 = vadd.f32 %v522_v10, %v355_v11 }
 0x156   :  { %v385_v14 = vadd.f32 %v384_v12, %v356_v13 }
 0x158   :  { %v505_v15 = vmul.f32 -1.442695, %v385_v14 }
 0x15a   :  { %555 = vpow2.f32 %v505_v15 }
 0x15b   :  { %v358_v53 = vpop.f32.mrf.mxu2 }
 0x15c   :  { %v387_v16 = vpop.f32.mrf.mxu3  ;;  %v359_v54 = vadd.f32 %v522_v10, %v358_v53 }
 0x15e   :  { %v388_v17 = vadd.f32 %v387_v16, %v359_v54 }
 0x160   :  { %v556_v18 = vpop.eup %555  ;;  %v506_v21 = vmul.f32 -1.442695, %v388_v17 }
 0x161   :  { %v408_v22 = vadd.f32 1.0, %v556_v18 }
 0x162   :  { %557 = vpow2.f32 %v506_v21 }
 0x163   :  { %559 = vrcp.f32 %v408_v22  ;;  %v361_v23 = vpop.f32.mrf.mxu2  ;;  %v423_v19 = vand.u32 2147483648, %v408_v22  ;;  %v421_v40 = vand.u32 2147483647, %v408_v22  ;;  %vm417_vm9 = vweird.f32 %v408_v22 }
 0x164   :  { %v390_v24 = vpop.f32.mrf.mxu3  ;;  %v362_v25 = vadd.f32 %v522_v10, %v361_v23 }
 0x165   :  { %v424_v46 = vor.u32 1.1754944e-38, %v423_v19  ;;  %vm422_vm11 = vcmp.eq.f32.partialorder %v421_v40, 8.507059e+37 }
 0x166   :  { %v391_v26 = vadd.f32 %v390_v24, %v362_v25 }
 0x168   :  { %v558_v27 = vpop.eup %557  ;;  %v507_v28 = vmul.f32 -1.442695, %v391_v26 }
 0x169   :  { %v560_v29 = vpop.eup %559  ;;  %v409_v30 = vadd.f32 1.0, %v558_v27 }
 0x16a   :  { %v413_v31 = vmul.f32 %v560_v29, %v408_v22  ;;  %561 = vpow2.f32 %v507_v28  ;;  %vm418_vm8 = vweird.f32 %v560_v29 }
 0x16b   :  { %563 = vrcp.f32 %v409_v30  ;;  %v364_v34 = vpop.f32.mrf.mxu2  ;;  %vm419_vm10 = vmor %vm417_vm9, %vm418_vm8  ;;  %v438_v52 = vand.u32 2147483648, %v409_v30  ;;  %v436_v55 = vand.u32 2147483647, %v409_v30  ;;  %vm432_vm13 = vweird.f32 %v409_v30 }
 0x16c   :  { %v414_v35 = vsub.f32 1.0, %v413_v31  ;;  %v365_v36 = vadd.f32 %v522_v10, %v364_v34  ;;  %v393_v37 = vpop.f32.mrf.mxu3 }
 0x16d   :  { %v439_v60 = vor.u32 1.1754944e-38, %v438_v52  ;;  %vm437_vm15 = vcmp.eq.f32.partialorder %v436_v55, 8.507059e+37 }
 0x16e   :  { %v415_v38 = vmul.f32 %v560_v29, %v414_v35  ;;  %v394_v39 = vadd.f32 %v393_v37, %v365_v36 }
 0x170   :  { %v562_v41 = vpop.eup %561  ;;  %v416_v43 = vadd.f32 %v560_v29, %v415_v38  ;;  %v508_v42 = vmul.f32 -1.442695, %v394_v39 }
 0x171   :  { %v564_v44 = vpop.eup %563  ;;  %v410_v45 = vadd.f32 1.0, %v562_v41 }
 0x172   :  { %v428_v47 = vmul.f32 %v564_v44, %v409_v30  ;;  %565 = vpow2.f32 %v508_v42  ;;  %v420_v20 = vsel %vm419_vm10, %v560_v29, %v416_v43  ;;  %vm433_vm12 = vweird.f32 %v564_v44 }
 0x173   :  { %567 = vrcp.f32 %v410_v45  ;;  %v425_v49 = vsel %vm422_vm11, %v424_v46, %v420_v20  ;;  %vm434_vm14 = vmor %vm432_vm13, %vm433_vm12  ;;  %v453_v1 = vand.u32 2147483648, %v410_v45  ;;  %v451_v4 = vand.u32 2147483647, %v410_v45 }
 0x174   :  { %v429_v48 = vsub.f32 1.0, %v428_v47  ;;  %v472_v50 = vmul.f32 2.004, %v425_v49  ;;  %vm447_vm1 = vweird.f32 %v410_v45 }
 0x175   :  { %v454_v7 = vor.u32 1.1754944e-38, %v453_v1  ;;  %vm452_vm3 = vcmp.eq.f32.partialorder %v451_v4, 8.507059e+37 }
 0x176   :  { %v430_v51 = vmul.f32 %v564_v44, %v429_v48  ;;  %v509_v56 = vadd.f32 -1.002, %v472_v50 }
 0x178   :  { %v566_v57 = vpop.eup %565  ;;  %v431_v58 = vadd.f32 %v564_v44, %v430_v51  ;;  %480 = vst [vmem:[#allocation10] sm:$0xff] %v509_v56 }
 0x179   :  { %v568_v32 = vpop.eup %567  ;;  %v411_v59 = vadd.f32 1.0, %v566_v57 }
 0x17a   :  { %v443_v61 = vmul.f32 %v568_v32, %v410_v45  ;;  %v435_v62 = vsel %vm434_vm14, %v564_v44, %v431_v58  ;;  %vm448_vm0 = vweird.f32 %v568_v32 }
 0x17b   :  { %569 = vrcp.f32 %v411_v59  ;;  %v440_v0 = vsel %vm437_vm15, %v439_v60, %v435_v62  ;;  %vm449_vm2 = vmor %vm447_vm1, %vm448_vm0  ;;  %v468_v13 = vand.u32 2147483648, %v411_v59  ;;  %v466_v15 = vand.u32 2147483647, %v411_v59 }
 0x17c   :  { %v444_v63 = vsub.f32 1.0, %v443_v61  ;;  %v473_v2 = vmul.f32 2.004, %v440_v0  ;;  %vm462_vm5 = vweird.f32 %v411_v59 }
 0x17d   :  { %v469_v54 = vor.u32 1.1754944e-38, %v468_v13  ;;  %vm467_vm7 = vcmp.eq.f32.partialorder %v466_v15, 8.507059e+37 }
 0x17e   :  { %v445_v3 = vmul.f32 %v568_v32, %v444_v63  ;;  %v510_v33 = vadd.f32 -1.002, %v473_v2 }
 0x180   :  { %v446_v5 = vadd.f32 %v568_v32, %v445_v3  ;;  %481 = vst [vmem:[#allocation10 + $0x8] sm:$0xff] %v510_v33 }
 0x181   :  { %v570_v6 = vpop.eup %569 }
 0x182   :  { %v458_v8 = vmul.f32 %v570_v6, %v411_v59  ;;  %v450_v9 = vsel %vm449_vm2, %v568_v32, %v446_v5  ;;  %vm463_vm4 = vweird.f32 %v570_v6 }
 0x183   :  { %v455_v10 = vsel %vm452_vm3, %v454_v7, %v450_v9  ;;  %vm464_vm6 = vmor %vm462_vm5, %vm463_vm4 }
 0x184   :  { %v459_v11 = vsub.f32 1.0, %v458_v8  ;;  %v474_v12 = vmul.f32 2.004, %v455_v10 }
 0x186   :  { %v460_v14 = vmul.f32 %v570_v6, %v459_v11  ;;  %v511_v53 = vadd.f32 -1.002, %v474_v12 }
 0x188   :  { %v461_v16 = vadd.f32 %v570_v6, %v460_v14  ;;  %482 = vst [vmem:[#allocation10 + $0x10] sm:$0xff] %v511_v53 }
 0x18a   :  { %v465_v17 = vsel %vm464_vm6, %v570_v6, %v461_v16 }
 0x18b   :  { %v470_v18 = vsel %vm467_vm7, %v469_v54, %v465_v17 }
 0x18c   :  { %v475_v21 = vmul.f32 2.004, %v470_v18 }
 0x18e   :  { %v512_v22 = vadd.f32 -1.002, %v475_v21 }
 0x190   :  { %483 = vst [vmem:[#allocation10 + $0x18] sm:$0xff] %v512_v22 }
 0x191   :  { %496 = dma.vmem_to_hbm [thread:$0]  %s489_s15, 512, %s491_s18, [#allocation4], %s703_s30, %s703_s30, %s704_s6  }
 0x192   :  { %697 = dma.done.wait [#allocation4], 512  }
 0x193   :  { %698 = vsyncadd [#allocation4], 4294966784 }
 0x194   :  { %501 = vsyncpa [#allocation3], 1 }
 0x195   :  { %502 = vsyncpa [#allocation6], 1 }
 0x196   :  { %503 = vsyncpa [#allocation9], 1 }
 0x197   :  { %504 = vsyncpa [#allocation4], 1 }

</bundles_post_ra>
